<compile_context>
chip_gen: v5e
topology: v5e:2x2
jax: 0.10.0
libtpu: 0.0.40
codegen_flags: <defaults>
</compile_context>

<pallas_src>
import functools

import jax
import jax.numpy as jnp
from jax import lax
from jax.experimental import pallas as pl
from jax.experimental.pallas import tpu as pltpu


def _round_up(x, m):
    return ((x + m - 1) // m) * m


def make_mlpq_kernel(num_layers):
    """Kernel refs: x_ref, (w_ref, b_ref) * num_layers, out_ref."""

    def kernel(*refs):
        x_ref = refs[0]          # (TB, obs_dim)  — batch-major, as stored in HBM
        out_ref = refs[-1]       # (1, TB)        — lane-dense output slab

        x = x_ref[...]

        # Layer 0: contract obs' feature dim (x dim 1) against W0 dim 0.
        # Result is (hidden0, TB): from here on the batch lives on lanes, so
        # every VPU op (bias add, ReLU) and the final store are full-width.
        w = refs[1][...]         # (obs_dim, hidden0) — stored dtype, fed to MXU as-is
        b = refs[2][...]         # (hidden0, 1) f32, broadcast along lanes
        h = lax.dot_general(
            w, x, (((0,), (1,)), ((), ())),
            preferred_element_type=jnp.float32) + b

        for i in range(1, num_layers):
            h = jnp.maximum(h, 0.0)          # ReLU on hidden activations only
            w = refs[1 + 2 * i][...]         # (in, out)
            b = refs[2 + 2 * i][...]         # (out, 1) f32
            if w.dtype != h.dtype:
                h = h.astype(w.dtype)        # keep MXU operands in the weight dtype
            h = lax.dot_general(
                w, h, (((0,), (0,)), ((), ())),
                preferred_element_type=jnp.float32) + b

        out_ref[...] = h.astype(out_ref.dtype)   # (1, TB), lane-dense store

    return kernel


@functools.partial(jax.jit, static_argnames=("batch_tile", "compute_dtype"))
def mlpq_forward(obs, params, *, batch_tile=2048, compute_dtype=None):
    """obs: (B, obs_dim).  params: list of (W (in, out), b (out,)).

    Returns Q values of shape (B,), matching torch.squeeze(self.q_net(obs), -1).
    compute_dtype: optionally cast obs/weights (e.g. jnp.bfloat16) to halve the
    dominant HBM read; accumulation stays f32.
    """
    B, obs_dim = obs.shape
    num_layers = len(params)

    if compute_dtype is not None:
        obs = obs.astype(compute_dtype)

    # ---- batch tiling ---------------------------------------------------------
    # TB is a multiple of 128 so the (1, TB) output block is lane-aligned and
    # the obs block satisfies the (8, 128) constraints.  Cap TB so the grid has
    # at least two steps whenever the batch allows it (keeps both v7x TCs busy).
    b128 = _round_up(B, 128)
    TB = _round_up(max(min(batch_tile, b128), 128), 128)
    if b128 >= 2 * 128:
        TB = min(TB, _round_up(b128 // 2, 128))
    B_pad = _round_up(B, TB)
    if B_pad != B:
        obs = jnp.pad(obs, ((0, B_pad - B), (0, 0)))
    grid = (B_pad // TB,)

    # ---- flatten inputs & build block specs -----------------------------------
    flat_inputs = [obs]
    in_specs = [pl.BlockSpec((TB, obs_dim), lambda i: (i, 0))]
    weight_bytes = 0
    flops = 0
    for w, b in params:
        if compute_dtype is not None:
            w = w.astype(compute_dtype)
        b2 = b.reshape(-1, 1).astype(jnp.float32)   # (out, 1): broadcasts along lanes
        flat_inputs.append(w)
        flat_inputs.append(b2)
        # Constant block index across the grid -> DMA'd once, stays VMEM-resident.
        # Single-buffered: no point double-buffering blocks that never change.
        in_specs.append(
            pl.BlockSpec(w.shape, lambda i: (0, 0), pipeline_mode=pl.Buffered(1))
        )
        in_specs.append(
            pl.BlockSpec(b2.shape, lambda i: (0, 0), pipeline_mode=pl.Buffered(1))
        )
        flops += 2 * B_pad * w.shape[0] * w.shape[1]
        weight_bytes += w.size * w.dtype.itemsize + b2.size * b2.dtype.itemsize

    # Lane-dense output: (1, B_pad) array, (1, TB) blocks along the lane axis.
    out_spec = pl.BlockSpec((1, TB), lambda i: (0, i))

    bytes_accessed = (
        B_pad * obs_dim * obs.dtype.itemsize + weight_bytes + B_pad * 4
    )
    cost = pl.CostEstimate(
        flops=flops, transcendentals=0, bytes_accessed=bytes_accessed
    )

    kernel = make_mlpq_kernel(num_layers)

    out = pl.pallas_call(
        kernel,
        out_shape=jax.ShapeDtypeStruct((1, B_pad), jnp.float32),
        grid=grid,
        in_specs=in_specs,
        out_specs=out_spec,
        compiler_params=pltpu.CompilerParams(
            # Batch axis is embarrassingly parallel -> sharded over both TCs on v7x.
            dimension_semantics=("parallel",),
            # Footprint is only a few hundred KiB; 32 MiB is safe on every gen.
            vmem_limit_bytes=32 * 1024 * 1024,
        ),
        cost_estimate=cost,
    )(*flat_inputs)

    return out[0, :B]                          # drop batch padding + squeeze(-1)


def init_mlpq_params(key, obs_dim, hidden_sizes):
    """Deterministic synthetic init for the q_net Linear layers."""
    sizes = [obs_dim] + list(hidden_sizes) + [1]
    params = []
    for j in range(len(sizes) - 1):
        key, kw, kb = jax.random.split(key, 3)
        fan_in = sizes[j]
        scale = 1.0 / jnp.sqrt(fan_in)
        w = jax.random.uniform(
            kw, (sizes[j], sizes[j + 1]), jnp.float32, -scale, scale
        )
        b = jax.random.uniform(kb, (sizes[j + 1],), jnp.float32, -scale, scale)
        params.append((w, b))
    return params


def mlpq_reference(obs, params):
    """Plain-JAX reference of the same forward pass (for correctness check)."""
    h = obs
    for i, (w, b) in enumerate(params):
        h = h @ w + b
        if i < len(params) - 1:
            h = jnp.maximum(h, 0.0)
    return h[..., 0]


if __name__ == "__main__":
    key = jax.random.PRNGKey(0)
    batch, obs_dim = 8, 16
    hidden_sizes = (32, 32)

    key, kx = jax.random.split(key)
    obs = jax.random.normal(kx, (batch, obs_dim), jnp.float32)
    params = init_mlpq_params(key, obs_dim, hidden_sizes)

    # Small-batch sanity run (single-tile grid, heavy padding path).
    q = jax.block_until_ready(mlpq_forward(obs, params))
    q_ref = mlpq_reference(obs, params)
    assert q.shape == (batch,), q.shape
    assert jnp.allclose(q, q_ref, atol=1e-5, rtol=1e-5), (q, q_ref)

    # Larger, non-tile-aligned batch exercises padding + a >=2-step parallel grid.
    key, kx2 = jax.random.split(key)
    obs_big = jax.random.normal(kx2, (1000, obs_dim), jnp.float32)
    q_big = jax.block_until_ready(mlpq_forward(obs_big, params))
    q_big_ref = mlpq_reference(obs_big, params)
    assert q_big.shape == (1000,), q_big.shape
    assert jnp.allclose(q_big, q_big_ref, atol=1e-5, rtol=1e-5)

    print("KERNEL_OK")
</pallas_src>

<mosaic_0001>
module attributes {stable_mosaic.version = 11 : i64} {
  func.func @kernel(%arg0: i32, %arg1: memref<128x16xf32, #tpu.memory_space<vmem>>, %arg2: memref<16x32xf32, #tpu.memory_space<vmem>>, %arg3: memref<32x1xf32, #tpu.memory_space<vmem>>, %arg4: memref<32x32xf32, #tpu.memory_space<vmem>>, %arg5: memref<32x1xf32, #tpu.memory_space<vmem>>, %arg6: memref<32x1xf32, #tpu.memory_space<vmem>>, %arg7: memref<1x1xf32, #tpu.memory_space<vmem>>, %arg8: memref<1x128xf32, #tpu.memory_space<vmem>>) attributes {dimension_semantics = [#tpu.dimension_semantics<parallel>], iteration_bounds = array<i64: 1>, scalar_prefetch = 0 : i64, scratch_operands = 0 : i64, tpu.core_type = #tpu.core_type<tc>, window_params = [{transform_indices = @transform_0, window_bounds = array<i64: 128, 16>}, {pipeline_mode = #tpu.pipeline_mode<synchronous>, transform_indices = @transform_1, window_bounds = array<i64: 16, 32>}, {pipeline_mode = #tpu.pipeline_mode<synchronous>, transform_indices = @transform_2, window_bounds = array<i64: 32, 1>}, {pipeline_mode = #tpu.pipeline_mode<synchronous>, transform_indices = @transform_3, window_bounds = array<i64: 32, 32>}, {pipeline_mode = #tpu.pipeline_mode<synchronous>, transform_indices = @transform_4, window_bounds = array<i64: 32, 1>}, {pipeline_mode = #tpu.pipeline_mode<synchronous>, transform_indices = @transform_5, window_bounds = array<i64: 32, 1>}, {pipeline_mode = #tpu.pipeline_mode<synchronous>, transform_indices = @transform_6, window_bounds = array<i64: 1, 1>}, {transform_indices = @transform_7, window_bounds = array<i64: 1, 128>}]} {
    %c0 = arith.constant 0 : index
    %c0_0 = arith.constant 0 : index
    %0 = vector.load %arg1[%c0, %c0_0] : memref<128x16xf32, #tpu.memory_space<vmem>>, vector<128x16xf32>
    %c0_1 = arith.constant 0 : index
    %c0_2 = arith.constant 0 : index
    %1 = vector.load %arg2[%c0_1, %c0_2] : memref<16x32xf32, #tpu.memory_space<vmem>>, vector<16x32xf32>
    %c0_3 = arith.constant 0 : index
    %c0_4 = arith.constant 0 : index
    %2 = vector.load %arg3[%c0_3, %c0_4] : memref<32x1xf32, #tpu.memory_space<vmem>>, vector<32x1xf32>
    %cst = arith.constant dense<0.000000e+00> : vector<32x128xf32>
    %3 = tpu.matmul %1, %0, %cst {dimension_numbers = #tpu.dot_dimension_numbers<[0], [1], [1], [0], [0, 1, 1, 0], [], []>} : vector<16x32xf32>, vector<128x16xf32>, vector<32x128xf32> -> vector<32x128xf32>
    %4 = vector.broadcast %2 : vector<32x1xf32> to vector<32x128xf32>
    %5 = arith.addf %3, %4 : vector<32x128xf32>
    %cst_5 = arith.constant 0.000000e+00 : f32
    %6 = vector.broadcast %cst_5 : f32 to vector<32x128xf32>
    %7 = arith.maximumf %5, %6 : vector<32x128xf32>
    %c0_6 = arith.constant 0 : index
    %c0_7 = arith.constant 0 : index
    %8 = vector.load %arg4[%c0_6, %c0_7] : memref<32x32xf32, #tpu.memory_space<vmem>>, vector<32x32xf32>
    %c0_8 = arith.constant 0 : index
    %c0_9 = arith.constant 0 : index
    %9 = vector.load %arg5[%c0_8, %c0_9] : memref<32x1xf32, #tpu.memory_space<vmem>>, vector<32x1xf32>
    %cst_10 = arith.constant dense<0.000000e+00> : vector<32x128xf32>
    %10 = tpu.matmul %8, %7, %cst_10 {dimension_numbers = #tpu.dot_dimension_numbers<[0], [0], [1], [1], [0, 1, 1, 1], [], []>} : vector<32x32xf32>, vector<32x128xf32>, vector<32x128xf32> -> vector<32x128xf32>
    %11 = vector.broadcast %9 : vector<32x1xf32> to vector<32x128xf32>
    %12 = arith.addf %10, %11 : vector<32x128xf32>
    %cst_11 = arith.constant 0.000000e+00 : f32
    %13 = vector.broadcast %cst_11 : f32 to vector<32x128xf32>
    %14 = arith.maximumf %12, %13 : vector<32x128xf32>
    %c0_12 = arith.constant 0 : index
    %c0_13 = arith.constant 0 : index
    %15 = vector.load %arg6[%c0_12, %c0_13] : memref<32x1xf32, #tpu.memory_space<vmem>>, vector<32x1xf32>
    %c0_14 = arith.constant 0 : index
    %c0_15 = arith.constant 0 : index
    %16 = vector.load %arg7[%c0_14, %c0_15] : memref<1x1xf32, #tpu.memory_space<vmem>>, vector<1x1xf32>
    %cst_16 = arith.constant dense<0.000000e+00> : vector<1x128xf32>
    %17 = tpu.matmul %15, %14, %cst_16 {dimension_numbers = #tpu.dot_dimension_numbers<[0], [0], [1], [1], [0, 1, 1, 1], [], []>} : vector<32x1xf32>, vector<32x128xf32>, vector<1x128xf32> -> vector<1x128xf32>
    %18 = vector.broadcast %16 : vector<1x1xf32> to vector<1x128xf32>
    %19 = arith.addf %17, %18 : vector<1x128xf32>
    %c0_17 = arith.constant 0 : index
    %c0_18 = arith.constant 0 : index
    %20 = vector.load %arg8[%c0_17, %c0_18] : memref<1x128xf32, #tpu.memory_space<vmem>>, vector<1x128xf32>
    tpu.vector_store %arg8[%c0_17, %c0_18], %19 {strides = array<i32>} : memref<1x128xf32, #tpu.memory_space<vmem>>, vector<1x128xf32>,
    return
  }
  func.func @transform_0(%arg0: i32) -> (i32, i32) {
    %c0_i32 = arith.constant 0 : i32
    %c0_i32_0 = arith.constant 0 : i32
    return %arg0, %c0_i32 : i32, i32
  }
  func.func @transform_1(%arg0: i32) -> (i32, i32) {
    %c0_i32 = arith.constant 0 : i32
    %c0_i32_0 = arith.constant 0 : i32
    %c0_i32_1 = arith.constant 0 : i32
    return %c0_i32, %c0_i32_0 : i32, i32
  }
  func.func @transform_2(%arg0: i32) -> (i32, i32) {
    %c0_i32 = arith.constant 0 : i32
    %c0_i32_0 = arith.constant 0 : i32
    %c0_i32_1 = arith.constant 0 : i32
    return %c0_i32, %c0_i32_0 : i32, i32
  }
  func.func @transform_3(%arg0: i32) -> (i32, i32) {
    %c0_i32 = arith.constant 0 : i32
    %c0_i32_0 = arith.constant 0 : i32
    %c0_i32_1 = arith.constant 0 : i32
    return %c0_i32, %c0_i32_0 : i32, i32
  }
  func.func @transform_4(%arg0: i32) -> (i32, i32) {
    %c0_i32 = arith.constant 0 : i32
    %c0_i32_0 = arith.constant 0 : i32
    %c0_i32_1 = arith.constant 0 : i32
    return %c0_i32, %c0_i32_0 : i32, i32
  }
  func.func @transform_5(%arg0: i32) -> (i32, i32) {
    %c0_i32 = arith.constant 0 : i32
    %c0_i32_0 = arith.constant 0 : i32
    %c0_i32_1 = arith.constant 0 : i32
    return %c0_i32, %c0_i32_0 : i32, i32
  }
  func.func @transform_6(%arg0: i32) -> (i32, i32) {
    %c0_i32 = arith.constant 0 : i32
    %c0_i32_0 = arith.constant 0 : i32
    %c0_i32_1 = arith.constant 0 : i32
    return %c0_i32, %c0_i32_0 : i32, i32
  }
  func.func @transform_7(%arg0: i32) -> (i32, i32) {
    %c0_i32 = arith.constant 0 : i32
    %c0_i32_0 = arith.constant 0 : i32
    return %c0_i32, %arg0 : i32, i32
  }
}

</mosaic_0001>

<bundles_post_ra>
// kernel: mlpq_forward.1
= control target key start
LH: loop header
LB: loop body
LE: loop exit
PB: predicated region body
PF: predicated region fallthrough
CT: control target
= control target key end

     0   :  { %vm102_vm0 = vcmask 130048   ;;  %v419_v21 = vmov 0   ;;  %vm256_vm1 = vcmask 261120   ;;  %s609_s1 = inlined_call_operand.vmem [shape: f32[16,32], index: 1, kind: input, shape index: {}]   ;;  %s610_s0 = inlined_call_operand.vmem [shape: f32[128,16], index: 0, kind: input, shape index: {}]   ;;  %s611_s3 = inlined_call_operand.vmem [shape: f32[32,32], index: 3, kind: input, shape index: {}]   ;;  %s612_s2 = inlined_call_operand.vmem [shape: f32[32,1], index: 2, kind: input, shape index: {}]   ;;  %s613_s4 = inlined_call_operand.vmem [shape: f32[32,1], index: 4, kind: input, shape index: {}]   ;;  %s614_s6 = inlined_call_operand.<no memory space> [shape: f32[1,1], index: 6, kind: input, shape index: {}]   ;;  %s615_s5 = inlined_call_operand.vmem [shape: f32[32,1], index: 5, kind: input, shape index: {}]   ;;  %s616_s7 = inlined_call_operand.vmem [shape: f32[1,128], index: 7, kind: output, shape index: {}]  }
   0x1   :  { %v44_v0 = vld [vmem:[%s609_s1] sm:$0xff]  ;;  %v43_v1 = vld [vmem:[%s610_s0 + $0x78] sm:$0xff]  ;;  %v42_v2 = vld [vmem:[%s610_s0 + $0x70] sm:$0xff]  ;;  %416 = vset.pattern.permute.xlu1 %v419_v21  ;;  %417 = vset.pattern.permute.xlu2 %v419_v21  ;;  %v12_v27 = vstv %s614_s6 }
   0x2   :  { %70 = vxpose.xlu0.b32.start [1/2] (short) (narrow) %v44_v0, 32  ;;  %373 = vmatpush.xpose.msk.msra.mxu0 %vm102_vm0, %v43_v1  ;;  %v45_v3 = vld [vmem:[%s609_s1 + $0x8] sm:$0xff]  ;;  %v40_v5 = vld [vmem:[%s610_s0 + $0x60] sm:$0xff]  ;;  %v39_v6 = vld [vmem:[%s610_s0 + $0x58] sm:$0xff]  ;;  %13 = vst [vmem:[#allocation2] sm:$0x1] %v12_v27 }
   0x3   :  { %398 = vmatpush.xpose.msk.msra.mxu3 %vm102_vm0, %v43_v1  ;;  %v41_v4 = vld [vmem:[%s610_s0 + $0x68] sm:$0xff]  ;;  %v38_v7 = vld [vmem:[%s610_s0 + $0x50] sm:$0xff]  ;;  %v36_v9 = vld [vmem:[%s610_s0 + $0x40] sm:$0xff] }
   0x4   :  { %v37_v8 = vld [vmem:[%s610_s0 + $0x48] sm:$0xff]  ;;  %v35_v10 = vld [vmem:[%s610_s0 + $0x38] sm:$0xff]  ;;  %v34_v11 = vld [vmem:[%s610_s0 + $0x30] sm:$0xff] }
   0x5   :  { %v33_v12 = vld [vmem:[%s610_s0 + $0x28] sm:$0xff]  ;;  %v32_v13 = vld [vmem:[%s610_s0 + $0x20] sm:$0xff]  ;;  %v31_v14 = vld [vmem:[%s610_s0 + $0x18] sm:$0xff] }
   0x6   :  { %374 = vmatpush.xpose.msk.msra.mxu0 %vm102_vm0, %v42_v2  ;;  %v30_v15 = vld [vmem:[%s610_s0 + $0x10] sm:$0xff]  ;;  %v29_v16 = vld [vmem:[%s610_s0 + $0x8] sm:$0xff]  ;;  %v28_v17 = vld [vmem:[%s610_s0] sm:$0xff] }
   0x7   :  { %399 = vmatpush.xpose.msk.msra.mxu3 %vm102_vm0, %v42_v2  ;;  %v196_v18 = vld [vmem:[%s611_s3] sm:$0xff]  ;;  %v197_v19 = vld [vmem:[%s611_s3 + $0x8] sm:$0xff]  ;;  %v49_v20 = vld [vmem:[%s612_s2 + $0x18] sm:$0xff] }
   0x8   :  { %67 = vperm.xlu1 %416, %v49_v20   ;;  %v198_v22 = vld [vmem:[%s611_s3 + $0x10] sm:$0xff]  ;;  %v199_v24 = vld [vmem:[%s611_s3 + $0x18] sm:$0xff]  ;;  %v47_v26 = vld [vmem:[%s612_s2 + $0x8] sm:$0xff] }
   0x9   :  { %v48_v23 = vld [vmem:[%s612_s2 + $0x10] sm:$0xff]  ;;  %v203_v25 = vld [vmem:[%s613_s4 + $0x18] sm:$0xff]  ;;  %57 = vperm.xlu2 %417, %v47_v26   ;;  %v46_v28 = vld [vmem:[%s612_s2] sm:$0xff] }
   0xa   :  { %71 = vxpose.xlu0.b32.end [2/2] (short) (narrow) %v45_v3, 32  ;;  %375 = vmatpush.xpose.msk.msra.mxu0 %vm102_vm0, %v41_v4  ;;  %v201_v30 = vld [vmem:[%s613_s4 + $0x8] sm:$0xff]  ;;  %v202_v31 = vld [vmem:[%s613_s4 + $0x10] sm:$0xff]  ;;  %v200_v33 = vld [vmem:[%s613_s4] sm:$0xff] }
   0xb   :  { %400 = vmatpush.xpose.msk.msra.mxu3 %vm102_vm0, %v41_v4  ;;  %v306_v35 = vld [vmem:[#allocation2] sm:$0x1]  ;;  %v303_v38 = vld [vmem:[%s615_s5 + $0x8] sm:$0xff]  ;;  %v304_v40 = vld [vmem:[%s615_s5 + $0x10] sm:$0xff] }
   0xc   :  { %v302_v37 = vld [vmem:[%s615_s5] sm:$0xff]  ;;  %v305_v44 = vld [vmem:[%s615_s5 + $0x18] sm:$0xff] }
   0xe   :  { %376 = vmatpush.xpose.msk.msra.mxu0 %vm102_vm0, %v40_v5 }
   0xf   :  { %401 = vmatpush.xpose.msk.msra.mxu3 %vm102_vm0, %v40_v5 }
  0x10   :  { %62 = vperm.xlu1 %416, %v48_v23  }
  0x11   :  { %52 = vperm.xlu2 %417, %v46_v28  }
  0x12   :  { %377 = vmatpush.xpose.msk.msra.mxu0 %vm102_vm0, %v39_v6 }
  0x13   :  { %402 = vmatpush.xpose.msk.msra.mxu3 %vm102_vm0, %v39_v6 }
  0x16   :  { %378 = vmatpush.xpose.msk.msra.mxu0 %vm102_vm0, %v38_v7 }
  0x17   :  { %403 = vmatpush.xpose.msk.msra.mxu3 %vm102_vm0, %v38_v7 }
  0x18   :  { %221 = vperm.xlu1 %416, %v203_v25  }
  0x19   :  { %216 = vperm.xlu2 %417, %v202_v31  }
  0x1a   :  { %379 = vmatpush.xpose.msk.msra.mxu0 %vm102_vm0, %v37_v8 }
  0x1b   :  { %404 = vmatpush.xpose.msk.msra.mxu3 %vm102_vm0, %v37_v8 }
  0x1e   :  { %380 = vmatpush.xpose.msk.msra.mxu0 %vm102_vm0, %v36_v9 }
  0x1f   :  { %405 = vmatpush.xpose.msk.msra.mxu3 %vm102_vm0, %v36_v9 }
  0x20   :  { %211 = vperm.xlu1 %416, %v201_v30  }
  0x21   :  { %206 = vperm.xlu2 %417, %v200_v33  }
  0x22   :  { %381 = vmatpush.xpose.msk.msra.mxu0 %vm102_vm0, %v35_v10  ;;  %224 = vxpose.xlu0.b32.start [1/4] (short) (narrow) %v196_v18, 32 }
  0x23   :  { %406 = vmatpush.xpose.msk.msra.mxu3 %vm102_vm0, %v35_v10 }
  0x26   :  { %382 = vmatpush.xpose.msk.msra.mxu0 %vm102_vm0, %v34_v11 }
  0x27   :  { %407 = vmatpush.xpose.msk.msra.mxu3 %vm102_vm0, %v34_v11 }
  0x29   :  { %309 = vperm.xlu2 %417, %v306_v35  }
  0x2a   :  { %383 = vmatpush.xpose.msk.msra.mxu0 %vm102_vm0, %v33_v12  ;;  %225 = vxpose.xlu0.b32.cont [2/4] (short) (narrow) %v197_v19, 32 }
  0x2b   :  { %408 = vmatpush.xpose.msk.msra.mxu3 %vm102_vm0, %v33_v12 }
  0x2e   :  { %384 = vmatpush.xpose.msk.msra.mxu0 %vm102_vm0, %v32_v13 }
  0x2f   :  { %409 = vmatpush.xpose.msk.msra.mxu3 %vm102_vm0, %v32_v13 }
  0x32   :  { %385 = vmatpush.xpose.msk.msra.mxu0 %vm102_vm0, %v31_v14  ;;  %226 = vxpose.xlu0.b32.cont [3/4] (short) (narrow) %v198_v22, 32 }
  0x33   :  { %410 = vmatpush.xpose.msk.msra.mxu3 %vm102_vm0, %v31_v14 }
  0x36   :  { %386 = vmatpush.xpose.msk.msra.mxu0 %vm102_vm0, %v30_v15 }
  0x37   :  { %411 = vmatpush.xpose.msk.msra.mxu3 %vm102_vm0, %v30_v15 }
  0x3a   :  { %387 = vmatpush.xpose.msk.msra.mxu0 %vm102_vm0, %v29_v16  ;;  %227 = vxpose.xlu0.b32.end [4/4] (short) (narrow) %v199_v24, 32 }
  0x3b   :  { %412 = vmatpush.xpose.msk.msra.mxu3 %vm102_vm0, %v29_v16 }
  0x3e   :  { %388 = vmatpush.xpose.msk.msra.mxu0 %vm102_vm0, %v28_v17 }
  0x3f   :  { %413 = vmatpush.xpose.msk.msra.mxu3 %vm102_vm0, %v28_v17 }
  0x55   :  { %313 = vxpose.xlu1.b32.start [1/4] (short) (narrow) %v302_v37, 8 }
  0x5d   :  { %314 = vxpose.xlu1.b32.cont [2/4] (short) (narrow) %v303_v38, 8 }
  0x63   :  { %v58_v42 = vpop.permute.xlu2 %57 }
  0x65   :  { %315 = vxpose.xlu1.b32.cont [3/4] (short) (narrow) %v304_v40, 8 }
  0x6b   :  { %v53_v49 = vpop.permute.xlu2 %52 }
  0x6d   :  { %316 = vxpose.xlu1.b32.end [4/4] (short) (narrow) %v305_v44, 8 }
  0x73   :  { %v217_v1 = vpop.permute.xlu2 %216 }
  0x7a   :  { %v68_v41 = vpop.permute.xlu1 %67 }
  0x7b   :  { %v207_v8 = vpop.permute.xlu2 %206 }
  0x82   :  { %v63_v45 = vpop.permute.xlu1 %62 }
  0x83   :  { %v310_v14 = vpop.permute.xlu2 %309 }
  0x84   :  { %v312_v15 = vperm.slane %v310_v14, 0 }
  0x8a   :  { %v222_v63 = vpop.permute.xlu1 %221 }
  0x92   :  { %v212_v3 = vpop.permute.xlu1 %211 }
  0xa1   :  { %418 = vset.pattern.permute.xlu0 %v419_v21 }
  0xa6   :  { %v86_v29 = vpop.trf.xlu0 }
  0xa7   :  { %389 = vmatmul.msk.f32.vlgmr.msra.gmra.mxu0 %vm102_vm0, %v86_v29 }
  0xae   :  { %v87_v32 = vpop.trf.xlu0 }
  0xaf   :  { %390 = vmatmul.msk.f32.vlgmr.msra.gmra.mxu3 %vm102_vm0, %v87_v32 }
  0xb6   :  { %v88_v34 = vpop.trf.xlu0 }
  0xb7   :  { %391 = vmatmul.msk.f32.gmra.mxu3 %vm102_vm0, %v88_v34 }
  0xbe   :  { %v89_v36 = vpop.trf.xlu0 }
  0xbf   :  { %392 = vmatmul.msk.f32.gmra.mxu3 %vm102_vm0, %v89_v36 }
  0xc6   :  { %v240_v53 = vpop.trf.xlu0 }
  0xce   :  { %v241_v58 = vpop.trf.xlu0 }
  0xd6   :  { %v242_v59 = vpop.trf.xlu0 }
  0xde   :  { %v243_v60 = vpop.trf.xlu0 }
  0xf9   :  { %v329_v13 = vpop.trf.xlu1 }
 0x124   :  { %v180_v50 = vpop.f32.mrf.mxu0 }
 0x125   :  { %v181_v54 = vadd.f32 %v180_v50, %v53_v49 }
 0x127   :  { %v192_v57 = vmax.f32 %v181_v54, 0.0 }
 0x132   :  { %v183_v39 = vpop.f32.mrf.mxu3 }
 0x133   :  { %v184_v51 = vadd.f32 %v183_v39, %v58_v42 }
 0x135   :  { %v193_v56 = vmax.f32 %v184_v51, 0.0 }
 0x13a   :  { %v186_v43 = vpop.f32.mrf.mxu3 }
 0x13b   :  { %v187_v47 = vadd.f32 %v186_v43, %v63_v45 }
 0x13d   :  { %v194_v55 = vmax.f32 %v187_v47, 0.0 }
 0x142   :  { %v189_v46 = vpop.f32.mrf.mxu3 }
 0x143   :  { %v190_v48 = vadd.f32 %v189_v46, %v68_v41 }
 0x145   :  { %v195_v52 = vmax.f32 %v190_v48, 0.0 }
 0x147   :  { %281 = vmatpush.msra.mxu1 %v195_v52 }
 0x149   :  { %282 = vmatpush.msra.mxu1 %v194_v55 }
 0x14b   :  { %283 = vmatpush.msra.mxu1 %v193_v56 }
 0x14d   :  { %284 = vmatpush.msra.mxu1 %v192_v57 }
 0x14e   :  { %393 = vmatmul.msk.f32.vlgmr.msra.gmra.mxu1 %vm256_vm1, %v240_v53 }
 0x156   :  { %394 = vmatmul.msk.f32.gmra.mxu1 %vm256_vm1, %v241_v58 }
 0x15e   :  { %395 = vmatmul.msk.f32.gmra.mxu1 %vm256_vm1, %v242_v59 }
 0x166   :  { %396 = vmatmul.msk.f32.gmra.mxu1 %vm256_vm1, %v243_v60 }
 0x1cb   :  { %v286_v61 = vpop.f32.mrf.mxu1 }
 0x1cc   :  { %v287_v9 = vadd.f32 %v286_v61, %v207_v8 }
 0x1ce   :  { %v298_v12 = vmax.f32 %v287_v9, 0.0 }
 0x1d3   :  { %v289_v62 = vpop.f32.mrf.mxu1 }
 0x1d4   :  { %v290_v6 = vadd.f32 %v289_v62, %v212_v3 }
 0x1d6   :  { %v299_v11 = vmax.f32 %v290_v6, 0.0 }
 0x1db   :  { %v292_v0 = vpop.f32.mrf.mxu1 }
 0x1dc   :  { %v293_v4 = vadd.f32 %v292_v0, %v217_v1 }
 0x1de   :  { %v300_v10 = vmax.f32 %v293_v4, 0.0 }
 0x1e3   :  { %v295_v2 = vpop.f32.mrf.mxu1 }
 0x1e4   :  { %v296_v5 = vadd.f32 %v295_v2, %v222_v63 }
 0x1e6   :  { %v301_v7 = vmax.f32 %v296_v5, 0.0 }
 0x1e8   :  { %360 = vmatpush.msra.mxu2 %v301_v7 }
 0x1ea   :  { %361 = vmatpush.msra.mxu2 %v300_v10 }
 0x1ec   :  { %362 = vmatpush.msra.mxu2 %v299_v11 }
 0x1ee   :  { %363 = vmatpush.msra.mxu2 %v298_v12 }
 0x1ef   :  { %397 = vmatmul.msk.f32.vlgmr.msra.gmra.mxu2 %vm256_vm1, %v329_v13 }
 0x272   :  { %v365_v16 = vpop.f32.mrf.mxu2 }
 0x273   :  { %v366_v17 = vadd.f32 %v365_v16, %v312_v15 }
 0x275   :  { %368 = vst [vmem:[%s616_s7] sm:$0x1] %v366_v17 }

</bundles_post_ra>
